<compile_context>
chip_gen: v5e
topology: v5e:2x2
jax: 0.10.0
libtpu: 0.0.40
codegen_flags: <defaults>
</compile_context>

<pallas_src>
import math
import functools

import jax
import jax.numpy as jnp
import numpy as np
from jax.experimental import pallas as pl
from jax.experimental.pallas import tpu as pltpu


def _pick_tile(dim, candidates):
    """Largest candidate that evenly divides `dim`, else the full dim."""
    for c in candidates:
        if dim % c == 0:
            return c
    return dim


# ---------------------------------------------------------------------------
# Tiled linear projection kernel (qkv projection and output projection)
# ---------------------------------------------------------------------------
def _matmul_kernel(x_ref, w_ref, o_ref, acc_ref):
    @pl.when(pl.program_id(2) == 0)
    def _init():
        acc_ref[...] = jnp.zeros(acc_ref.shape, acc_ref.dtype)

    acc_ref[...] += jnp.dot(
        x_ref[...], w_ref[...], preferred_element_type=jnp.float32
    )

    @pl.when(pl.program_id(2) == pl.num_programs(2) - 1)
    def _done():
        o_ref[...] = acc_ref[...].astype(o_ref.dtype)


def linear(x2d, w):
    """y = x2d @ w  (w already stored as (in, out))."""
    M, K = x2d.shape
    K2, N = w.shape
    assert K == K2
    tm = _pick_tile(M, (512, 256, 128))
    tn = _pick_tile(N, (512, 256, 128))
    tk = _pick_tile(K, (512, 256, 128))
    return pl.pallas_call(
        _matmul_kernel,
        out_shape=jax.ShapeDtypeStruct((M, N), x2d.dtype),
        grid=(M // tm, N // tn, K // tk),
        in_specs=[
            pl.BlockSpec((tm, tk), lambda i, j, k: (i, k)),
            pl.BlockSpec((tk, tn), lambda i, j, k: (k, j)),
        ],
        out_specs=pl.BlockSpec((tm, tn), lambda i, j, k: (i, j)),
        scratch_shapes=[pltpu.VMEM((tm, tn), jnp.float32)],
        compiler_params=pltpu.CompilerParams(
            dimension_semantics=("parallel", "parallel", "arbitrary"),
            vmem_limit_bytes=32 * 1024 * 1024,
        ),
    )(x2d, w)


# ---------------------------------------------------------------------------
# Flash-style grouped-query attention kernel.
# Grid: (B, kv_head, q_tile, k_tile); the G query groups of one kv-head are
# folded into the q block so K/V is fetched once per kv-head and the MXU sees
# an M dimension of G * tq.
# ---------------------------------------------------------------------------
def _flash_gqa_kernel(*refs, scale, has_mask):
    if has_mask:
        q_ref, k_ref, v_ref, m_ref, o_ref, m_sc, l_sc, acc_sc = refs
    else:
        q_ref, k_ref, v_ref, o_ref, m_sc, l_sc, acc_sc = refs
        m_ref = None

    ki = pl.program_id(3)

    @pl.when(ki == 0)
    def _init():
        m_sc[...] = jnp.full(m_sc.shape, -jnp.inf, m_sc.dtype)
        l_sc[...] = jnp.zeros(l_sc.shape, l_sc.dtype)
        acc_sc[...] = jnp.zeros(acc_sc.shape, acc_sc.dtype)

    q = q_ref[...] * scale                   # (G, tq, D); scale folded into q
    k = k_ref[...]                           # (tk, D)
    v = v_ref[...]                           # (tk, D)
    G, tq, D = q.shape
    tk = k.shape[0]

    # scores = (q * scale) @ k^T, groups stacked along the MXU M dimension.
    s = jax.lax.dot_general(
        q.reshape(G * tq, D), k, (((1,), (1,)), ((), ())),
        preferred_element_type=jnp.float32,
    ).reshape(G, tq, tk)
    if m_ref is not None:
        s = s + m_ref[...]                   # additive mask, broadcast over G

    # online (flash) softmax: running max / sum / unnormalized accumulator.
    m_prev = m_sc[...]
    m_new = jnp.maximum(m_prev, jnp.max(s, axis=-1, keepdims=True))
    alpha = jnp.exp(m_prev - m_new)
    p = jnp.exp(s - m_new)
    l_sc[...] = alpha * l_sc[...] + jnp.sum(p, axis=-1, keepdims=True)
    pv = jnp.dot(
        p.reshape(G * tq, tk).astype(v.dtype), v,
        preferred_element_type=jnp.float32,
    ).reshape(G, tq, D)
    acc_sc[...] = alpha * acc_sc[...] + pv
    m_sc[...] = m_new

    # TODO(synk): attn_score_dropout is identity here (inference/eval semantics).

    @pl.when(ki == pl.num_programs(3) - 1)
    def _done():
        inv = pl.reciprocal(l_sc[...], approx=True)     # normalize after PV
        o_ref[...] = (acc_sc[...] * inv).astype(o_ref.dtype)


def grouped_attention(q, k, v, mask, scale):
    """q: (B,G,H,L,D), k/v: (B,H,L,D), mask: (L,L) additive or None
       -> (B,H,G,L,D)."""
    B, G, H, L, D = q.shape
    tq = _pick_tile(L, (512, 256, 128))
    tk = _pick_tile(L, (512, 256, 128))
    has_mask = mask is not None
    kernel = functools.partial(_flash_gqa_kernel, scale=scale, has_mask=has_mask)

    in_specs = [
        pl.BlockSpec((None, G, None, tq, D),
                     lambda b, h, qi, ki: (b, 0, h, qi, 0)),
        pl.BlockSpec((None, None, tk, D),
                     lambda b, h, qi, ki: (b, h, ki, 0)),
        pl.BlockSpec((None, None, tk, D),
                     lambda b, h, qi, ki: (b, h, ki, 0)),
    ]
    args = [q, k, v]
    if has_mask:
        in_specs.append(pl.BlockSpec((tq, tk), lambda b, h, qi, ki: (qi, ki)))
        args.append(mask)

    return pl.pallas_call(
        kernel,
        out_shape=jax.ShapeDtypeStruct((B, H, G, L, D), q.dtype),
        grid=(B, H, L // tq, L // tk),
        in_specs=in_specs,
        out_specs=pl.BlockSpec((None, None, G, tq, D),
                               lambda b, h, qi, ki: (b, h, 0, qi, 0)),
        scratch_shapes=[
            pltpu.VMEM((G, tq, 1), jnp.float32),   # running max
            pltpu.VMEM((G, tq, 1), jnp.float32),   # running denom
            pltpu.VMEM((G, tq, D), jnp.float32),   # unnormalized output
        ],
        compiler_params=pltpu.CompilerParams(
            dimension_semantics=("parallel", "parallel", "parallel", "arbitrary"),
            vmem_limit_bytes=32 * 1024 * 1024,
        ),
    )(*args)


# ---------------------------------------------------------------------------
# Full forward pass (matches Attention.forward, eval-mode dropout)
# ---------------------------------------------------------------------------
def attention_forward(x, w_qkv, w_out, mask, n_heads, n_kvheads):
    B, L, d_model = x.shape
    head_dim = d_model // n_heads
    H = n_kvheads
    G = n_heads // n_kvheads

    # qkv projection (tiled Pallas matmul)
    qkv = linear(x.reshape(B * L, d_model), w_qkv).reshape(B, L, -1)

    # split and *raw reshape* exactly as the PyTorch module does
    q, k, v = jnp.split(
        qkv,
        [n_heads * head_dim, (n_heads + n_kvheads) * head_dim],
        axis=-1,
    )
    q = q.reshape(B, G, H, L, head_dim)
    k = k.reshape(B, H, L, head_dim)
    v = v.reshape(B, H, L, head_dim)

    if mask is None:
        mask2d = None
    else:
        mask2d = jnp.broadcast_to(jnp.asarray(mask, jnp.float32), (L, L))

    out = grouped_attention(q, k, v, mask2d, head_dim ** (-0.5))  # (B,H,G,L,D)

    # rearrange 'b g h l d -> b l (g h d)'  (kernel output is (B,H,G,L,D))
    out = jnp.transpose(out, (0, 3, 2, 1, 4)).reshape(B, L, d_model)

    # output projection (tiled Pallas matmul)
    return linear(out.reshape(B * L, d_model), w_out).reshape(B, L, d_model)


# ---------------------------------------------------------------------------
# Pure-jnp reference of the PyTorch module (eval mode) for a correctness check
# ---------------------------------------------------------------------------
def _reference_forward(x, w_qkv, w_out, mask, n_heads, n_kvheads):
    B, L, d_model = x.shape
    head_dim = d_model // n_heads
    G = n_heads // n_kvheads
    H = n_kvheads
    qkv = x @ w_qkv
    q, k, v = jnp.split(
        qkv, [n_heads * head_dim, (n_heads + n_kvheads) * head_dim], axis=-1)
    q = q.reshape(B, G, H, L, head_dim)
    k = k.reshape(B, H, L, head_dim)
    v = v.reshape(B, H, L, head_dim)
    s = jnp.einsum('bghld,bhjd->bghlj', q, k) * head_dim ** (-0.5)
    if mask is not None:
        s = s + mask
    p = jax.nn.softmax(s, axis=-1)
    o = jnp.einsum('bghlj,bhjd->bghld', p, v)
    o = jnp.transpose(o, (0, 3, 1, 2, 4)).reshape(B, L, d_model)
    return o @ w_out


if __name__ == "__main__":
    B, L = 2, 8
    d_model, n_heads, n_kvheads = 32, 4, 2
    head_dim = d_model // n_heads
    qkv_out = head_dim * (n_heads + 2 * n_kvheads)

    key = jax.random.PRNGKey(0)
    kx, kq, ko = jax.random.split(key, 3)

    x = jax.random.normal(kx, (B, L, d_model), jnp.float32)

    # deterministic Linear-style init: U(-1/sqrt(fan_in), 1/sqrt(fan_in)),
    # stored transposed as (in, out)
    bound = 1.0 / math.sqrt(d_model)
    w_qkv = jax.random.uniform(kq, (d_model, qkv_out), jnp.float32, -bound, bound)
    w_out = jax.random.uniform(ko, (d_model, d_model), jnp.float32, -bound, bound)

    # additive causal mask (L, L)
    mask = jnp.where(jnp.tril(jnp.ones((L, L), bool)), 0.0, -1e9).astype(jnp.float32)

    out = attention_forward(x, w_qkv, w_out, mask, n_heads, n_kvheads)
    out = jax.block_until_ready(out)
    assert out.shape == (B, L, d_model)

    ref = _reference_forward(x, w_qkv, w_out, mask, n_heads, n_kvheads)
    np.testing.assert_allclose(np.asarray(out), np.asarray(ref), rtol=1e-2, atol=1e-2)

    # also exercise the mask=None fast path (no mask stream into the kernel)
    out_nm = jax.block_until_ready(
        attention_forward(x, w_qkv, w_out, None, n_heads, n_kvheads))
    ref_nm = _reference_forward(x, w_qkv, w_out, None, n_heads, n_kvheads)
    np.testing.assert_allclose(np.asarray(out_nm), np.asarray(ref_nm),
                               rtol=1e-2, atol=1e-2)

    print("KERNEL_OK")
</pallas_src>

<mosaic_0001>
module attributes {stable_mosaic.version = 11 : i64} {
  func.func @_matmul_kernel(%arg0: i32, %arg1: i32, %arg2: i32, %arg3: memref<16x32xf32, #tpu.memory_space<vmem>>, %arg4: memref<32x64xf32, #tpu.memory_space<vmem>>, %arg5: memref<16x64xf32, #tpu.memory_space<vmem>>, %arg6: memref<16x64xf32, #tpu.memory_space<vmem>>) attributes {dimension_semantics = [#tpu.dimension_semantics<parallel>, #tpu.dimension_semantics<parallel>, #tpu.dimension_semantics<arbitrary>], iteration_bounds = array<i64: 1, 1, 1>, scalar_prefetch = 0 : i64, scratch_operands = 1 : i64, tpu.core_type = #tpu.core_type<tc>, window_params = [{transform_indices = @transform_0, window_bounds = array<i64: 16, 32>}, {transform_indices = @transform_1, window_bounds = array<i64: 32, 64>}, {transform_indices = @transform_2, window_bounds = array<i64: 16, 64>}]} {
    %c0_i32 = arith.constant 0 : i32
    %0 = arith.cmpi eq, %arg2, %c0_i32 : i32
    %1 = arith.extui %0 : i1 to i32
    %c0_i32_0 = arith.constant 0 : i32
    %2 = arith.cmpi ne, %1, %c0_i32_0 : i32
    scf.if %2 {
      %cst_10 = arith.constant 0.000000e+00 : f32
      %12 = vector.broadcast %cst_10 : f32 to vector<16x64xf32>
      %c0_11 = arith.constant 0 : index
      %c0_12 = arith.constant 0 : index
      %13 = vector.load %arg6[%c0_11, %c0_12] : memref<16x64xf32, #tpu.memory_space<vmem>>, vector<16x64xf32>
      tpu.vector_store %arg6[%c0_11, %c0_12], %12 {strides = array<i32>} : memref<16x64xf32, #tpu.memory_space<vmem>>, vector<16x64xf32>,
    } else {
    }
    %c0 = arith.constant 0 : index
    %c0_1 = arith.constant 0 : index
    %3 = vector.load %arg6[%c0, %c0_1] : memref<16x64xf32, #tpu.memory_space<vmem>>, vector<16x64xf32>
    %c0_2 = arith.constant 0 : index
    %c0_3 = arith.constant 0 : index
    %4 = vector.load %arg3[%c0_2, %c0_3] : memref<16x32xf32, #tpu.memory_space<vmem>>, vector<16x32xf32>
    %c0_4 = arith.constant 0 : index
    %c0_5 = arith.constant 0 : index
    %5 = vector.load %arg4[%c0_4, %c0_5] : memref<32x64xf32, #tpu.memory_space<vmem>>, vector<32x64xf32>
    %cst = arith.constant dense<0.000000e+00> : vector<16x64xf32>
    %6 = tpu.matmul %4, %5, %cst {dimension_numbers = #tpu.dot_dimension_numbers<[1], [0], [0], [1], [0, 0, 1, 1], [], []>} : vector<16x32xf32>, vector<32x64xf32>, vector<16x64xf32> -> vector<16x64xf32>
    %7 = arith.addf %3, %6 : vector<16x64xf32>
    %c0_6 = arith.constant 0 : index
    %c0_7 = arith.constant 0 : index
    %8 = vector.load %arg6[%c0_6, %c0_7] : memref<16x64xf32, #tpu.memory_space<vmem>>, vector<16x64xf32>
    tpu.vector_store %arg6[%c0_6, %c0_7], %7 {strides = array<i32>} : memref<16x64xf32, #tpu.memory_space<vmem>>, vector<16x64xf32>,
    %c0_i32_8 = arith.constant 0 : i32
    %9 = arith.cmpi eq, %arg2, %c0_i32_8 : i32
    %10 = arith.extui %9 : i1 to i32
    %c0_i32_9 = arith.constant 0 : i32
    %11 = arith.cmpi ne, %10, %c0_i32_9 : i32
    scf.if %11 {
      %c0_10 = arith.constant 0 : index
      %c0_11 = arith.constant 0 : index
      %12 = vector.load %arg6[%c0_10, %c0_11] : memref<16x64xf32, #tpu.memory_space<vmem>>, vector<16x64xf32>
      %c0_12 = arith.constant 0 : index
      %c0_13 = arith.constant 0 : index
      %13 = vector.load %arg5[%c0_12, %c0_13] : memref<16x64xf32, #tpu.memory_space<vmem>>, vector<16x64xf32>
      tpu.vector_store %arg5[%c0_12, %c0_13], %12 {strides = array<i32>} : memref<16x64xf32, #tpu.memory_space<vmem>>, vector<16x64xf32>,
    } else {
    }
    return
  }
  func.func @transform_0(%arg0: i32, %arg1: i32, %arg2: i32) -> (i32, i32) {
    %c0_i32 = arith.constant 0 : i32
    return %arg0, %arg2 : i32, i32
  }
  func.func @transform_1(%arg0: i32, %arg1: i32, %arg2: i32) -> (i32, i32) {
    %c0_i32 = arith.constant 0 : i32
    return %arg2, %arg1 : i32, i32
  }
  func.func @transform_2(%arg0: i32, %arg1: i32, %arg2: i32) -> (i32, i32) {
    %c0_i32 = arith.constant 0 : i32
    return %arg0, %arg1 : i32, i32
  }
}

</mosaic_0001>

<bundles_post_ra>
// kernel: tpu_custom_call.1
= control target key start
LH: loop header
LB: loop body
LE: loop exit
PB: predicated region body
PF: predicated region fallthrough
CT: control target
= control target key end

     0   :  { %7 = vsyncpa [#allocation4], 0  ;;  %s256_s0 = inlined_call_operand.hbm [shape: f32[16,32], index: 0, kind: input, shape index: {}]   ;;  %s257_s1 = inlined_call_operand.hbm [shape: f32[32,64], index: 1, kind: input, shape index: {}]   ;;  %s258_s2 = inlined_call_operand.hbm [shape: f32[16,64], index: 2, kind: output, shape index: {}]  }
   0x1   :  { %8 = vsyncpa [#allocation7], 0 }
   0x2   :  { %9 = vsyncpa [#allocation5], 0  ;;  %s14_s11 = sshll.u32 %s256_s0, 4  ;;  %s211_s12 = smov [#allocation3]   ;;  %s15_s11 = int_to_ptr.hbm [resolvable:$true] %s14_s11 }
   0x3   :  { %s16_s13 = sshll.u32 %s211_s12, 4  ;;  %s27_s16 = sshll.u32 %s257_s1, 4  ;;  %s17_s13 = int_to_ptr.vmem [resolvable:$true] %s16_s13  ;;  %s28_s16 = int_to_ptr.hbm [resolvable:$true] %s27_s16 }
   0x4   :  { %s212_s17 = smov 128   ;;  %s213_s18 = smov 8  }
   0x5   :  { %22 = dma.hbm_to_vmem [thread:$0]  %s15_s11, 256, %s17_s13, [#allocation4], %s212_s17, %s212_s17, %s213_s18  }
   0x6   :  { %s214_s19 = smov [#allocation6]  }
   0x7   :  { %s29_s20 = sshll.u32 %s214_s19, 4  ;;  %s30_s20 = int_to_ptr.vmem [resolvable:$true] %s29_s20 }
   0x8   :  { %35 = dma.hbm_to_vmem [thread:$0]  %s28_s16, 512, %s30_s20, [#allocation7], %s212_s17, %s212_s17, %s213_s18  }
   0x9   :  { %205 = dma.done.wait [#allocation4], 256  }
   0xa   :  { %206 = vsyncadd [#allocation4], 4294967040 }
   0xb   :  { %207 = dma.done.wait [#allocation7], 512  }
   0xc   :  { %208 = vsyncadd [#allocation7], 4294966784  ;;  %vm48_vm0 = vcmask 523264   ;;  %v215_v0 = vmov 0.0   ;;  %v58_v1 = vld [vmem:[#allocation6 + $0x18] sm:$0xff]  ;;  %v57_v2 = vld [vmem:[#allocation6 + $0x10] sm:$0xff] }
   0xd   :  { %49 = vst.msk [vmem:[#allocation2] sm:$0xff] %vm48_vm0, %v215_v0  ;;  %78 = vmatpush.msra.mxu0 %v58_v1  ;;  %123 = vmatpush.msra.mxu1 %v58_v1  ;;  %v56_v3 = vld [vmem:[#allocation6 + $0x8] sm:$0xff]  ;;  %v55_v4 = vld [vmem:[#allocation6] sm:$0xff]  ;;  %v53_v5 = vld [vmem:[#allocation3] sm:$0xff]  ;;  %vm59_vm1 = vcmask 261120   ;;  %s216_s0 = smov [#allocation8]  }
   0xe   :  { %50 = vst.msk [vmem:[#allocation2 + $0x8] sm:$0xff] %vm48_vm0, %v215_v0  ;;  %v54_v6 = vld [vmem:[#allocation3 + $0x8] sm:$0xff]  ;;  %s105_s1 = sshll.u32 %s216_s0, 4  ;;  %s107_s23 = sshll.u32 %s258_s2, 4  ;;  %s106_s1 = int_to_ptr.vmem [resolvable:$true] %s105_s1  ;;  %s108_s23 = int_to_ptr.hbm [resolvable:$true] %s107_s23 }
   0xf   :  { %79 = vmatpush.msra.mxu0 %v57_v2  ;;  %124 = vmatpush.msra.mxu1 %v57_v2 }
  0x11   :  { %80 = vmatpush.msra.mxu0 %v56_v3  ;;  %125 = vmatpush.msra.mxu1 %v56_v3 }
  0x13   :  { %81 = vmatpush.msra.mxu0 %v55_v4  ;;  %126 = vmatpush.msra.mxu1 %v55_v4 }
  0x14   :  { %121 = vmatmul.msk.f32.vlgmr.msra.gmra.mxu0 %vm59_vm1, %v53_v5  ;;  %122 = vmatmul.msk.f32.vlgmr.msra.gmra.mxu1 %vm59_vm1, %v54_v6  ;;  %v51_v7 = vld [vmem:[#allocation2] sm:$0xff] }
  0x15   :  { %v52_v8 = vld [vmem:[#allocation2 + $0x8] sm:$0xff] }
  0x91   :  { %v83_v9 = vpop.f32.mrf.mxu0  ;;  %v86_v10 = vpop.f32.mrf.mxu1 }
  0x92   :  { %v89_v11 = vadd.f32 %v83_v9, %v51_v7  ;;  %v90_v12 = vadd.f32 %v86_v10, %v52_v8 }
  0x94   :  { %92 = vst.msk [vmem:[#allocation2] sm:$0xff] %vm48_vm0, %v89_v11 }
  0x95   :  { %93 = vst.msk [vmem:[#allocation2 + $0x8] sm:$0xff] %vm48_vm0, %v90_v12 }
  0x9b   :  { %v97_v13 = vld [vmem:[#allocation2] sm:$0xff] }
  0x9c   :  { %v98_v14 = vld [vmem:[#allocation2 + $0x8] sm:$0xff]  ;;  %99 = vst.msk [vmem:[#allocation8] sm:$0xff] %vm48_vm0, %v97_v13 }
  0x9d   :  { %100 = vst.msk [vmem:[#allocation8 + $0x8] sm:$0xff] %vm48_vm0, %v98_v14 }
  0x9e   :  { %113 = dma.vmem_to_hbm [thread:$0]  %s106_s1, 256, %s108_s23, [#allocation5], %s212_s17, %s212_s17, %s213_s18  }
  0x9f   :  { %209 = dma.done.wait [#allocation5], 256  }
  0xa0   :  { %210 = vsyncadd [#allocation5], 4294967040 }
  0xa1   :  { %118 = vsyncpa [#allocation4], 1 }
  0xa2   :  { %119 = vsyncpa [#allocation7], 1 }
  0xa3   :  { %120 = vsyncpa [#allocation5], 1 }

</bundles_post_ra>
